<compile_context>
chip_gen: v5e
topology: v5e:2x2
jax: 0.10.0
libtpu: 0.0.40
codegen_flags: <defaults>
</compile_context>

<pallas_src>
import functools

import jax
import jax.numpy as jnp
from jax.experimental import pallas as pl
from jax.experimental.pallas import tpu as pltpu


def _round_up(x, m):
    return ((x + m - 1) // m) * m


def _num_tensorcores():
    """2 on v7x-class chips (megacore split pays off), 1 on v5e/v6e."""
    try:
        kind = jax.devices()[0].device_kind.lower()
    except Exception:
        return 1
    return 2 if ("v7" in kind or "7x" in kind or "v4" in kind) else 1


def _mlp_kernel(x_ref, w1_ref, w2_ref, packed_ref, b3_ref, o_ref):
    # x_ref: (in_dim, bt) feature-major — batch on the 128-lane axis.
    x = x_ref[...]
    w1 = w1_ref[...]                      # (h1, in_dim), PyTorch layout, used directly
    w2 = w2_ref[...]                      # (h2, h1)
    h1 = w1.shape[0]
    h2 = w2.shape[0]

    packed = packed_ref[...]              # (hmax, 3) f32: [b1 | b2 | w3] columns
    b1 = packed[:h1, 0:1]                 # (h1, 1)
    b2 = packed[:h2, 1:2]                 # (h2, 1)
    w3 = packed[:h2, 2:3]                 # (h2, 1)

    # fc1: (h1, in) @ (in, bt) -> (h1, bt); bias broadcasts over lanes; ReLU.
    a1 = jnp.dot(w1, x, preferred_element_type=jnp.float32)
    a1 = jnp.maximum(a1 + b1, 0.0)

    # fc2: (h2, h1) @ (h1, bt) -> (h2, bt)
    a2 = jnp.dot(w2, a1.astype(w2.dtype), preferred_element_type=jnp.float32)
    a2 = jnp.maximum(a2 + b2, 0.0)

    # fc3 (single output feature): VPU multiply + sublane reduce -> (1, bt),
    # lane-dense output.  b3 is a scalar read from SMEM.
    y = jnp.sum(a2 * w3, axis=0, keepdims=True) + b3_ref[0]
    o_ref[...] = jax.nn.sigmoid(y).astype(o_ref.dtype)


def prepare_params(params, compute_dtype=jnp.float32):
    """One-time conversion of PyTorch-layout params to kernel layout.

    Weights keep their PyTorch (out, in) layout (the feature-major kernel uses
    them directly).  b1, b2 and the fc3 weight column are packed into a single
    (hmax, 3) f32 operand; the fc3 bias becomes an SMEM scalar.  Optionally
    casts the matmul operands (w1, w2) to bf16.
    """
    h1 = params["w1"].shape[0]
    h2 = params["w2"].shape[0]
    hmax = max(h1, h2)

    def col(v, h):
        c = v.reshape(-1, 1).astype(jnp.float32)
        return jnp.pad(c, ((0, hmax - h), (0, 0)))

    packed = jnp.concatenate(
        [col(params["b1"], h1), col(params["b2"], h2), col(params["w3"], h2)],
        axis=1)                                              # (hmax, 3)

    return dict(
        w1=params["w1"].astype(compute_dtype),               # (h1, in)
        w2=params["w2"].astype(compute_dtype),               # (h2, h1)
        packed=packed,                                       # (hmax, 3) f32
        b3=params["b3"].reshape(1).astype(jnp.float32),      # scalar -> SMEM
    )


def prepare_input(x, compute_dtype=jnp.float32):
    """One-time / upstream: batch-major (B, in_dim) -> feature-major (in_dim, B)
    so the kernel's x tile is lane-dense.  Do this at data-prep time, not per
    forward call, to avoid an extra HBM pass over x."""
    return x.T.astype(compute_dtype)


@functools.partial(jax.jit, static_argnames=("batch_tile",))
def ffnet2hidden_forward(x_fm, kparams, *, batch_tile=8192):
    """x_fm: feature-major input (input_size, B).  kparams: prepare_params()."""
    in_dim, B = x_fm.shape
    h1 = kparams["w1"].shape[0]
    h2 = kparams["w2"].shape[0]
    hmax = kparams["packed"].shape[0]

    # Batch tile: lane-aligned (multiple of 128).  Only split into multiple
    # balanced steps on multi-TensorCore chips (v7x) where "parallel" shards
    # the grid; on 1-TC chips a single step avoids pure serial step overhead.
    ncores = _num_tensorcores()
    if ncores > 1 and B > 128:
        bt = _round_up(pl.cdiv(B, ncores), 128)
    else:
        bt = _round_up(B, 128)
    bt = max(128, min(bt, _round_up(batch_tile, 128)))

    grid = (pl.cdiv(B, bt),)
    b_pad = grid[0] * bt  # output is padded (cheap: 4*b_pad bytes); x is NOT padded —
                          # the last (partial) x block is handled by Pallas edge masking.

    out = pl.pallas_call(
        _mlp_kernel,
        out_shape=jax.ShapeDtypeStruct((1, b_pad), jnp.float32),
        grid_spec=pltpu.PrefetchScalarGridSpec(
            num_scalar_prefetch=0,
            grid=grid,
            in_specs=[
                pl.BlockSpec((in_dim, bt), lambda i: (0, i)),        # x tile (lane-dense)
                pl.BlockSpec((h1, in_dim), lambda i: (0, 0)),        # fc1 weight
                pl.BlockSpec((h2, h1), lambda i: (0, 0)),            # fc2 weight
                pl.BlockSpec((hmax, 3), lambda i: (0, 0)),           # packed b1|b2|w3
                pl.BlockSpec(memory_space=pltpu.MemorySpace.SMEM),   # fc3 bias scalar
            ],
            out_specs=pl.BlockSpec((1, bt), lambda i: (0, i)),       # lane-dense output
        ),
        compiler_params=pltpu.CompilerParams(
            dimension_semantics=("parallel",)),
    )(x_fm, kparams["w1"], kparams["w2"], kparams["packed"], kparams["b3"])

    return out[0, :B].reshape(B, 1)


def init_params(key, input_size, hidden_sizes):
    """Deterministic init mimicking PyTorch nn.Linear default:
    U(-1/sqrt(fan_in), 1/sqrt(fan_in)) for both weight and bias."""
    h1, h2 = hidden_sizes
    dims = [(h1, input_size), (h2, h1), (1, h2)]
    params = {}
    for idx, (out_f, in_f) in enumerate(dims, start=1):
        key, kw, kb = jax.random.split(key, 3)
        bound = 1.0 / jnp.sqrt(in_f)
        params[f"w{idx}"] = jax.random.uniform(
            kw, (out_f, in_f), jnp.float32, minval=-bound, maxval=bound)
        params[f"b{idx}"] = jax.random.uniform(
            kb, (out_f,), jnp.float32, minval=-bound, maxval=bound)
    return params


def _reference_forward(x, params):
    # Pure-JAX reference mirroring the PyTorch forward.
    h = jnp.maximum(x @ params["w1"].T + params["b1"], 0.0)
    h = jnp.maximum(h @ params["w2"].T + params["b2"], 0.0)
    return jax.nn.sigmoid(h @ params["w3"].T + params["b3"])


if __name__ == "__main__":
    key = jax.random.PRNGKey(0)
    key, kx = jax.random.split(key)

    input_size = 16
    hidden_sizes = (32, 32)
    batch = 300   # not a multiple of 128: exercises the partial last block (no pad copy)

    params = init_params(key, input_size, hidden_sizes)
    x = jax.random.normal(kx, (batch, input_size), jnp.float32)
    ref = _reference_forward(x, params)

    # f32-operand path (matches PyTorch semantics up to default MXU precision).
    kparams = prepare_params(params)
    x_fm = prepare_input(x)
    out = jax.block_until_ready(ffnet2hidden_forward(x_fm, kparams))
    assert out.shape == (batch, 1)
    assert jnp.max(jnp.abs(out - ref)) < 2e-3

    # bf16-operand path (halves dominant x HBM traffic on v6e/v7x; f32 accumulate,
    # f32 bias / ReLU / sigmoid).
    kparams_bf16 = prepare_params(params, compute_dtype=jnp.bfloat16)
    x_fm_bf16 = prepare_input(x, compute_dtype=jnp.bfloat16)
    out_bf16 = jax.block_until_ready(ffnet2hidden_forward(x_fm_bf16, kparams_bf16))
    assert out_bf16.shape == (batch, 1)
    assert jnp.max(jnp.abs(out_bf16 - ref)) < 3e-2

    print("KERNEL_OK")
</pallas_src>

<mosaic_0001>
module attributes {stable_mosaic.version = 11 : i64} {
  func.func @_mlp_kernel(%arg0: i32, %arg1: memref<16x384xf32, #tpu.memory_space<vmem>>, %arg2: memref<32x16xf32, #tpu.memory_space<vmem>>, %arg3: memref<32x32xf32, #tpu.memory_space<vmem>>, %arg4: memref<32x3xf32, #tpu.memory_space<vmem>>, %arg5: memref<1xf32, #tpu.memory_space<smem>>, %arg6: memref<1x384xf32, #tpu.memory_space<vmem>>) attributes {dimension_semantics = [#tpu.dimension_semantics<parallel>], iteration_bounds = array<i64: 1>, scalar_prefetch = 0 : i64, scratch_operands = 0 : i64, tpu.core_type = #tpu.core_type<tc>, window_params = [{transform_indices = @transform_0, window_bounds = array<i64: 16, 384>}, {pipeline_mode = #tpu.pipeline_mode<synchronous>, transform_indices = @transform_1, window_bounds = array<i64: 32, 16>}, {pipeline_mode = #tpu.pipeline_mode<synchronous>, transform_indices = @transform_2, window_bounds = array<i64: 32, 32>}, {pipeline_mode = #tpu.pipeline_mode<synchronous>, transform_indices = @transform_3, window_bounds = array<i64: 32, 3>}, {transform_indices = @transform_4, window_bounds = array<i64: 1>}, {transform_indices = @transform_5, window_bounds = array<i64: 1, 384>}]} {
    %c0 = arith.constant 0 : index
    %c0_0 = arith.constant 0 : index
    %0 = vector.load %arg1[%c0, %c0_0] : memref<16x384xf32, #tpu.memory_space<vmem>>, vector<16x384xf32>
    %c0_1 = arith.constant 0 : index
    %c0_2 = arith.constant 0 : index
    %1 = vector.load %arg2[%c0_1, %c0_2] : memref<32x16xf32, #tpu.memory_space<vmem>>, vector<32x16xf32>
    %c0_3 = arith.constant 0 : index
    %c0_4 = arith.constant 0 : index
    %2 = vector.load %arg3[%c0_3, %c0_4] : memref<32x32xf32, #tpu.memory_space<vmem>>, vector<32x32xf32>
    %c0_5 = arith.constant 0 : index
    %c0_6 = arith.constant 0 : index
    %3 = vector.load %arg4[%c0_5, %c0_6] : memref<32x3xf32, #tpu.memory_space<vmem>>, vector<32x3xf32>
    %4 = vector.extract_strided_slice %3 {offsets = [0, 0], sizes = [32, 1], strides = [1, 1]} : vector<32x3xf32> to vector<32x1xf32>
    %5 = vector.extract_strided_slice %3 {offsets = [0, 1], sizes = [32, 1], strides = [1, 1]} : vector<32x3xf32> to vector<32x1xf32>
    %6 = vector.extract_strided_slice %3 {offsets = [0, 2], sizes = [32, 1], strides = [1, 1]} : vector<32x3xf32> to vector<32x1xf32>
    %cst = arith.constant dense<0.000000e+00> : vector<32x384xf32>
    %7 = tpu.matmul %1, %0, %cst {dimension_numbers = #tpu.dot_dimension_numbers<[1], [0], [0], [1], [0, 0, 1, 1], [], []>} : vector<32x16xf32>, vector<16x384xf32>, vector<32x384xf32> -> vector<32x384xf32>
    %8 = vector.broadcast %4 : vector<32x1xf32> to vector<32x384xf32>
    %9 = arith.addf %7, %8 : vector<32x384xf32>
    %cst_7 = arith.constant 0.000000e+00 : f32
    %10 = vector.broadcast %cst_7 : f32 to vector<32x384xf32>
    %11 = arith.maximumf %9, %10 : vector<32x384xf32>
    %cst_8 = arith.constant dense<0.000000e+00> : vector<32x384xf32>
    %12 = tpu.matmul %2, %11, %cst_8 {dimension_numbers = #tpu.dot_dimension_numbers<[1], [0], [0], [1], [0, 0, 1, 1], [], []>} : vector<32x32xf32>, vector<32x384xf32>, vector<32x384xf32> -> vector<32x384xf32>
    %13 = vector.broadcast %5 : vector<32x1xf32> to vector<32x384xf32>
    %14 = arith.addf %12, %13 : vector<32x384xf32>
    %cst_9 = arith.constant 0.000000e+00 : f32
    %15 = vector.broadcast %cst_9 : f32 to vector<32x384xf32>
    %16 = arith.maximumf %14, %15 : vector<32x384xf32>
    %17 = vector.broadcast %6 : vector<32x1xf32> to vector<32x384xf32>
    %18 = arith.mulf %16, %17 : vector<32x384xf32>
    %cst_10 = arith.constant dense<0.000000e+00> : vector<384xf32>
    %19 = vector.multi_reduction <add>, %18, %cst_10 [0] : vector<32x384xf32> to vector<384xf32>
    %20 = vector.shape_cast %19 : vector<384xf32> to vector<1x384xf32>
    %c0_11 = arith.constant 0 : index
    %21 = memref.load %arg5[%c0_11] : memref<1xf32, #tpu.memory_space<smem>>
    %22 = vector.broadcast %21 : f32 to vector<1x384xf32>
    %23 = arith.addf %20, %22 : vector<1x384xf32>
    %24 = arith.negf %23 : vector<1x384xf32>
    %25 = math.exp %24 : vector<1x384xf32>
    %cst_12 = arith.constant 1.000000e+00 : f32
    %26 = vector.broadcast %cst_12 : f32 to vector<1x384xf32>
    %27 = arith.addf %26, %25 : vector<1x384xf32>
    %28 = arith.divf %26, %27 : vector<1x384xf32>
    %c0_13 = arith.constant 0 : index
    %c0_14 = arith.constant 0 : index
    %29 = vector.load %arg6[%c0_13, %c0_14] : memref<1x384xf32, #tpu.memory_space<vmem>>, vector<1x384xf32>
    tpu.vector_store %arg6[%c0_13, %c0_14], %28 {strides = array<i32>} : memref<1x384xf32, #tpu.memory_space<vmem>>, vector<1x384xf32>,
    return
  }
  func.func @transform_0(%arg0: i32) -> (i32, i32) {
    %c0_i32 = arith.constant 0 : i32
    %c0_i32_0 = arith.constant 0 : i32
    return %c0_i32, %arg0 : i32, i32
  }
  func.func @transform_1(%arg0: i32) -> (i32, i32) {
    %c0_i32 = arith.constant 0 : i32
    %c0_i32_0 = arith.constant 0 : i32
    %c0_i32_1 = arith.constant 0 : i32
    return %c0_i32, %c0_i32_0 : i32, i32
  }
  func.func @transform_2(%arg0: i32) -> (i32, i32) {
    %c0_i32 = arith.constant 0 : i32
    %c0_i32_0 = arith.constant 0 : i32
    %c0_i32_1 = arith.constant 0 : i32
    return %c0_i32, %c0_i32_0 : i32, i32
  }
  func.func @transform_3(%arg0: i32) -> (i32, i32) {
    %c0_i32 = arith.constant 0 : i32
    %c0_i32_0 = arith.constant 0 : i32
    %c0_i32_1 = arith.constant 0 : i32
    return %c0_i32, %c0_i32_0 : i32, i32
  }
  func.func @transform_4(%arg0: i32) -> i32 {
    %c0_i32 = arith.constant 0 : i32
    %c0_i32_0 = arith.constant 0 : i32
    return %c0_i32 : i32
  }
  func.func @transform_5(%arg0: i32) -> (i32, i32) {
    %c0_i32 = arith.constant 0 : i32
    %c0_i32_0 = arith.constant 0 : i32
    return %c0_i32, %arg0 : i32, i32
  }
}

</mosaic_0001>

<bundles_post_ra>
// kernel: ffnet2hidden_forward.1
= control target key start
LH: loop header
LB: loop body
LE: loop exit
PB: predicated region body
PF: predicated region fallthrough
CT: control target
= control target key end

     0   :  { %11 = vsyncpa [#allocation4], 0  ;;  %s535_s21 = smov [#allocation3]   ;;  %s536_s23 = smov 128   ;;  %s686_s0 = inlined_call_operand.vmem [shape: f32[16,300], index: 0, kind: input, shape index: {}]   ;;  %s687_s1 = inlined_call_operand.vmem [shape: f32[32,16], index: 1, kind: input, shape index: {}]   ;;  %s688_s2 = inlined_call_operand.hbm [shape: f32[32,32], index: 2, kind: input, shape index: {}]   ;;  %s689_s3 = inlined_call_operand.vmem [shape: f32[32,3], index: 3, kind: input, shape index: {}]   ;;  %s690_s4 = inlined_call_operand.<no memory space> [shape: f32[1], index: 4, kind: input, shape index: {}]   ;;  %s691_s5 = inlined_call_operand.vmem [shape: f32[1,384], index: 5, kind: output, shape index: {}]  }
   0x1   :  { %s20_s20 = sshll.u32 %s688_s2, 4  ;;  %s22_s22 = sshll.u32 %s535_s21, 4  ;;  %s21_s20 = int_to_ptr.hbm [resolvable:$true] %s20_s20  ;;  %s23_s22 = int_to_ptr.vmem [resolvable:$true] %s22_s22 }
   0x2   :  { %s537_s24 = smov 8  }
   0x3   :  { %28 = dma.hbm_to_vmem [thread:$0]  %s21_s20, 512, %s23_s22, [#allocation4], %s536_s23, %s536_s23, %s537_s24  }
   0x4   :  { %533 = dma.done.wait [#allocation4], 512  }
   0x5   :  { %534 = vsyncadd [#allocation4], 4294966784  ;;  %v538_v0 = vmov 0   ;;  %v40_v1 = vld [vmem:[%s686_s0 + $0x18] sm:$0xff]  ;;  %v41_v2 = vld [vmem:[%s686_s0 + $0x20] sm:$0xff]  ;;  %vm75_vm0 = vcmask 130048  }
   0x6   :  { %489 = vset.pattern.permute.xlu0 %v538_v0  ;;  %490 = vset.pattern.permute.xlu1 %v538_v0  ;;  %v37_v3 = vld [vmem:[%s686_s0] sm:$0xff]  ;;  %v45_v4 = vld [vmem:[%s687_s1 + $0x10] sm:$0xff]  ;;  %v38_v5 = vld [vmem:[%s686_s0 + $0x8] sm:$0xff]  ;;  %v539_v41 = vmov 1   ;;  %vm203_vm1 = vcmask 261120   ;;  %v540_v47 = vmov 2  }
   0x7   :  { %479 = vmatpush.msra.mxu2 %v40_v1  ;;  %481 = vmatpush.msra.mxu3 %v41_v2  ;;  %v592_v6 = vld [vmem:[%s689_s3 + $0x18] sm:$0xff]  ;;  %v42_v7 = vld [vmem:[%s686_s0 + $0x28] sm:$0xff]  ;;  %v43_v8 = vld [vmem:[%s687_s1] sm:$0xff]  ;;  %vm437_vm13 = vcmask 1040384   ;;  %vm439_vm15 = vcmask 1041408  }
   0x8   :  { %102 = vmatpush.msra.mxu0 %v40_v1  ;;  %131 = vmatpush.msra.mxu1 %v41_v2  ;;  %v605_v9 = vld [vmem:[%s689_s3 + $0x8] sm:$0xff]  ;;  %v39_v10 = vld [vmem:[%s686_s0 + $0x10] sm:$0xff]  ;;  %v46_v11 = vld [vmem:[%s687_s1 + $0x18] sm:$0xff] }
   0x9   :  { %480 = vmatpush.msra.mxu2 %v37_v3  ;;  %482 = vmatpush.msra.mxu3 %v38_v5  ;;  %v620_v12 = vld [vmem:[%s689_s3 + $0x10] sm:$0xff]  ;;  %v44_v13 = vld [vmem:[%s687_s1 + $0x8] sm:$0xff]  ;;  %v630_v14 = vld [vmem:[%s689_s3] sm:$0xff] }
   0xa   :  { %454 = vmatmul.msk.f32.vlgmr.msra.gmra.mxu2 %vm75_vm0, %v45_v4  ;;  %458 = vmatmul.msk.f32.vlgmr.msra.gmra.mxu3 %vm75_vm0, %v45_v4  ;;  %v47_v45 = vld [vmem:[#allocation3] sm:$0xff]  ;;  %v48_v48 = vld [vmem:[#allocation3 + $0x8] sm:$0xff]  ;;  %v49_v50 = vld [vmem:[#allocation3 + $0x10] sm:$0xff] }
   0xb   :  { %72 = vperm.xlu0 %489, %v592_v6   ;;  %103 = vmatpush.msra.mxu0 %v37_v3  ;;  %v50_v54 = vld [vmem:[#allocation3 + $0x18] sm:$0xff] }
   0xc   :  { %160 = vmatpush.msrb.mxu2 %v42_v7  ;;  %452 = vmatmul.msk.f32.vlgmr.msra.gmra.mxu0 %vm75_vm0, %v43_v8 }
   0xd   :  { %132 = vmatpush.msra.mxu1 %v38_v5  ;;  %62 = vperm.xlu1 %490, %v605_v9  }
   0xe   :  { %456 = vmatmul.msk.f32.vlgmr.msra.gmra.mxu1 %vm75_vm0, %v43_v8  ;;  %161 = vmatpush.msrb.mxu2 %v39_v10 }
   0xf   :  { %491 = vset.pattern.permute.xlu2 %v539_v41 }
  0x10   :  { %188 = vperm.xlu2 %491, %v630_v14  }
  0x12   :  { %455 = vmatmul.msk.f32.gmra.mxu2 %vm75_vm0, %v46_v11  ;;  %459 = vmatmul.msk.f32.gmra.mxu3 %vm75_vm0, %v46_v11 }
  0x13   :  { %67 = vperm.xlu0 %489, %v620_v12  }
  0x14   :  { %453 = vmatmul.msk.f32.gmra.mxu0 %vm75_vm0, %v44_v13 }
  0x15   :  { %57 = vperm.xlu1 %490, %v630_v14  }
  0x16   :  { %457 = vmatmul.msk.f32.gmra.mxu1 %vm75_vm0, %v44_v13 }
  0x18   :  { %192 = vperm.xlu2 %491, %v605_v9  }
  0x1a   :  { %460 = vmatmul.msk.f32.vlgmr.msrb.gmra.mxu2 %vm75_vm0, %v43_v8 }
  0x1b   :  { %492 = vset.pattern.permute.xlu0 %v539_v41 }
  0x1c   :  { %196 = vperm.xlu0 %492, %v620_v12  }
  0x1d   :  { %493 = vset.pattern.permute.xlu1 %v539_v41 }
  0x1e   :  { %200 = vperm.xlu1 %493, %v592_v6  }
  0x20   :  { %494 = vset.pattern.permute.xlu2 %v540_v47 }
  0x21   :  { %316 = vperm.xlu2 %494, %v630_v14  }
  0x22   :  { %461 = vmatmul.msk.f32.gmra.mxu2 %vm75_vm0, %v44_v13 }
  0x24   :  { %496 = vset.pattern.permute.xlu0 %v540_v47 }
  0x25   :  { %328 = vperm.xlu0 %496, %v592_v6  }
  0x26   :  { %495 = vset.pattern.permute.xlu1 %v540_v47 }
  0x27   :  { %320 = vperm.xlu1 %495, %v605_v9  }
  0x29   :  { %324 = vperm.xlu2 %494, %v620_v12  }
  0x2a   :  { %462 = vmatmul.msk.f32.gmra.mxu2 %vm75_vm0, %v45_v4 }
  0x32   :  { %463 = vmatmul.msk.f32.gmra.mxu2 %vm75_vm0, %v46_v11 }
  0x6a   :  { %v189_v61 = vpop.permute.xlu2 %188 }
  0x72   :  { %v193_v63 = vpop.permute.xlu2 %192 }
  0x7b   :  { %v672_v3 = vpop.permute.xlu2 %316 }
  0x7d   :  { %v640_v15 = vpop.permute.xlu0 %72 }
  0x7f   :  { %v642_v17 = vpop.permute.xlu1 %62 }
  0x85   :  { %v68_v21 = vpop.permute.xlu0 %67 }
  0x87   :  { %v58_v25 = vpop.permute.xlu1 %57 }
  0x89   :  { %v105_v16 = vpop.f32.mrf.mxu0 }
  0x8a   :  { %v106_v33 = vadd.f32 %v105_v16, %v58_v25 }
  0x8b   :  { %v134_v18 = vpop.f32.mrf.mxu1 }
  0x8c   :  { %v135_v37 = vadd.f32 %v134_v18, %v58_v25  ;;  %v175_v42 = vmax.f32 %v106_v33, 0.0  ;;  %v325_v18 = vpop.permute.xlu2 %324 }
  0x8d   :  { %v111_v19 = vpop.f32.mrf.mxu2  ;;  %v140_v20 = vpop.f32.mrf.mxu3 }
  0x8e   :  { %v141_v24 = vadd.f32 %v140_v20, %v68_v21  ;;  %v112_v26 = vadd.f32 %v111_v19, %v68_v21  ;;  %v176_v43 = vmax.f32 %v135_v37, 0.0  ;;  %v197_v8 = vpop.permute.xlu0 %196 }
  0x90   :  { %v182_v34 = vmax.f32 %v141_v24, 0.0  ;;  %v181_v38 = vmax.f32 %v112_v26, 0.0  ;;  %v670_v1 = vpop.permute.xlu1 %200 }
  0x91   :  { %v108_v22 = vpop.f32.mrf.mxu0 }
  0x92   :  { %v109_v31 = vadd.f32 %v108_v22, %v642_v17 }
  0x93   :  { %v137_v23 = vpop.f32.mrf.mxu1 }
  0x94   :  { %v138_v32 = vadd.f32 %v137_v23, %v642_v17  ;;  %v178_v39 = vmax.f32 %v109_v31, 0.0 }
  0x95   :  { %v114_v27 = vpop.f32.mrf.mxu2  ;;  %v143_v28 = vpop.f32.mrf.mxu3 }
  0x96   :  { %v115_v29 = vadd.f32 %v114_v27, %v640_v15  ;;  %v144_v30 = vadd.f32 %v143_v28, %v640_v15  ;;  %v179_v40 = vmax.f32 %v138_v32, 0.0 }
  0x98   :  { %v184_v35 = vmax.f32 %v115_v29, 0.0  ;;  %v185_v36 = vmax.f32 %v144_v30, 0.0  ;;  %v329_v30 = vpop.permute.xlu0 %328 }
  0x99   :  { %v321_v11 = vpop.permute.xlu1 %320 }
  0x9a   :  { %228 = vmatpush.msrb.mxu3 %v184_v35  ;;  %257 = vmatpush.msrb.mxu0 %v185_v36 }
  0x9c   :  { %229 = vmatpush.msrb.mxu3 %v181_v38  ;;  %258 = vmatpush.msrb.mxu0 %v182_v34 }
  0x9d   :  { %v163_v44 = vpop.f32.mrf.mxu2 }
  0x9e   :  { %230 = vmatpush.msrb.mxu3 %v178_v39  ;;  %259 = vmatpush.msrb.mxu0 %v179_v40  ;;  %v164_v57 = vadd.f32 %v163_v44, %v58_v25 }
  0xa0   :  { %231 = vmatpush.msrb.mxu3 %v175_v42  ;;  %260 = vmatpush.msrb.mxu0 %v176_v43  ;;  %v177_v60 = vmax.f32 %v164_v57, 0.0 }
  0xa1   :  { %464 = vmatmul.msk.f32.vlgmr.msrb.gmra.mxu3 %vm203_vm1, %v47_v45  ;;  %468 = vmatmul.msk.f32.vlgmr.msrb.gmra.mxu0 %vm203_vm1, %v47_v45 }
  0xa5   :  { %v166_v46 = vpop.f32.mrf.mxu2 }
  0xa6   :  { %v167_v55 = vadd.f32 %v166_v46, %v642_v17 }
  0xa8   :  { %v180_v59 = vmax.f32 %v167_v55, 0.0 }
  0xa9   :  { %465 = vmatmul.msk.f32.gmra.mxu3 %vm203_vm1, %v48_v48  ;;  %469 = vmatmul.msk.f32.gmra.mxu0 %vm203_vm1, %v48_v48 }
  0xad   :  { %v169_v49 = vpop.f32.mrf.mxu2 }
  0xae   :  { %v170_v52 = vadd.f32 %v169_v49, %v68_v21 }
  0xb0   :  { %v183_v58 = vmax.f32 %v170_v52, 0.0 }
  0xb1   :  { %466 = vmatmul.msk.f32.gmra.mxu3 %vm203_vm1, %v49_v50  ;;  %470 = vmatmul.msk.f32.gmra.mxu0 %vm203_vm1, %v49_v50 }
  0xb5   :  { %v172_v51 = vpop.f32.mrf.mxu2 }
  0xb6   :  { %v173_v53 = vadd.f32 %v172_v51, %v640_v15 }
  0xb8   :  { %v186_v56 = vmax.f32 %v173_v53, 0.0 }
  0xb9   :  { %467 = vmatmul.msk.f32.gmra.mxu3 %vm203_vm1, %v50_v54  ;;  %471 = vmatmul.msk.f32.gmra.mxu0 %vm203_vm1, %v50_v54 }
  0xba   :  { %286 = vmatpush.msrb.mxu1 %v186_v56 }
  0xbc   :  { %287 = vmatpush.msrb.mxu1 %v183_v58 }
  0xbe   :  { %288 = vmatpush.msrb.mxu1 %v180_v59 }
  0xc0   :  { %289 = vmatpush.msrb.mxu1 %v177_v60  ;;  %v371_v60 = vstv %s690_s4 }
  0xc1   :  { %472 = vmatmul.msk.f32.vlgmr.msrb.gmra.mxu1 %vm203_vm1, %v47_v45 }
  0xc9   :  { %473 = vmatmul.msk.f32.gmra.mxu1 %vm203_vm1, %v48_v48 }
  0xd1   :  { %474 = vmatmul.msk.f32.gmra.mxu1 %vm203_vm1, %v49_v50 }
  0xd9   :  { %475 = vmatmul.msk.f32.gmra.mxu1 %vm203_vm1, %v50_v54 }
 0x11e   :  { %v262_v62 = vpop.f32.mrf.mxu0 }
 0x11f   :  { %v263_v4 = vadd.f32 %v262_v62, %v189_v61 }
 0x121   :  { %v304_v7 = vmax.f32 %v263_v4, 0.0 }
 0x123   :  { %v332_v15 = vmul.f32 %v672_v3, %v304_v7 }
 0x124   :  { %v233_v0 = vpop.f32.mrf.mxu3 }
 0x125   :  { %v234_v12 = vadd.f32 %v233_v0, %v189_v61 }
 0x126   :  { %v265_v2 = vpop.f32.mrf.mxu0 }
 0x127   :  { %v266_v5 = vadd.f32 %v265_v2, %v193_v63  ;;  %v303_v19 = vmax.f32 %v234_v12, 0.0 }
 0x129   :  { %v307_v9 = vmax.f32 %v266_v5, 0.0  ;;  %v331_v26 = vmul.f32 %v672_v3, %v303_v19 }
 0x12b   :  { %v335_v16 = vmul.f32 %v321_v11, %v307_v9 }
 0x12c   :  { %v236_v6 = vpop.f32.mrf.mxu3 }
 0x12d   :  { %v237_v13 = vadd.f32 %v236_v6, %v193_v63  ;;  %v352_v23 = vadd.f32 %v335_v16, %v332_v15 }
 0x12e   :  { %v268_v10 = vpop.f32.mrf.mxu0 }
 0x12f   :  { %v269_v14 = vadd.f32 %v268_v10, %v197_v8  ;;  %v306_v20 = vmax.f32 %v237_v13, 0.0 }
 0x131   :  { %v310_v17 = vmax.f32 %v269_v14, 0.0  ;;  %v334_v28 = vmul.f32 %v321_v11, %v306_v20 }
 0x133   :  { %v338_v24 = vmul.f32 %v325_v18, %v310_v17  ;;  %v343_v33 = vadd.f32 %v334_v28, %v331_v26 }
 0x134   :  { %v239_v21 = vpop.f32.mrf.mxu3 }
 0x135   :  { %v240_v22 = vadd.f32 %v239_v21, %v197_v8  ;;  %v353_v32 = vadd.f32 %v352_v23, %v338_v24 }
 0x136   :  { %v271_v25 = vpop.f32.mrf.mxu0 }
 0x137   :  { %v309_v27 = vmax.f32 %v240_v22, 0.0  ;;  %v272_v29 = vadd.f32 %v271_v25, %v670_v1 }
 0x139   :  { %v313_v31 = vmax.f32 %v272_v29, 0.0  ;;  %v337_v34 = vmul.f32 %v325_v18, %v309_v27 }
 0x13b   :  { %v341_v35 = vmul.f32 %v329_v30, %v313_v31  ;;  %v344_v40 = vadd.f32 %v343_v33, %v337_v34 }
 0x13c   :  { %v242_v36 = vpop.f32.mrf.mxu3 }
 0x13d   :  { %v354_v37 = vadd.f32 %v353_v32, %v341_v35  ;;  %v243_v38 = vadd.f32 %v242_v36, %v670_v1 }
 0x13e   :  { %v291_v39 = vpop.f32.mrf.mxu1 }
 0x13f   :  { %v355_v41 = vrot.slane %v354_v37, 4  ;;  %v312_v42 = vmax.f32 %v243_v38, 0.0  ;;  %v292_v57 = vadd.f32 %v291_v39, %v189_v61 }
 0x141   :  { %v356_v43 = vadd.f32 %v355_v41, %v354_v37  ;;  %v340_v44 = vmul.f32 %v329_v30, %v312_v42  ;;  %v305_v2 = vmax.f32 %v292_v57, 0.0 }
 0x143   :  { %v345_v45 = vadd.f32 %v344_v40, %v340_v44  ;;  %v357_v46 = vrot.slane %v356_v43, 2  ;;  %v333_v10 = vmul.f32 %v672_v3, %v305_v2 }
 0x145   :  { %v346_v47 = vrot.slane %v345_v45, 4  ;;  %v358_v50 = vadd.f32 %v357_v46, %v356_v43 }
 0x146   :  { %v294_v48 = vpop.f32.mrf.mxu1 }
 0x147   :  { %v347_v49 = vadd.f32 %v346_v47, %v345_v45  ;;  %v359_v53 = vrot.slane %v358_v50, 1  ;;  %v295_v54 = vadd.f32 %v294_v48, %v193_v63 }
 0x149   :  { %v348_v51 = vrot.slane %v347_v49, 2  ;;  %v360_v59 = vadd.f32 %v359_v53, %v358_v50  ;;  %v308_v62 = vmax.f32 %v295_v54, 0.0 }
 0x14b   :  { %v349_v52 = vadd.f32 %v348_v51, %v347_v49  ;;  %v373_v5 = vadd.f32 %v371_v60, %v360_v59  ;;  %v336_v6 = vmul.f32 %v321_v11, %v308_v62 }
 0x14d   :  { %v350_v55 = vrot.slane %v349_v52, 1  ;;  %v477_v61 = vmul.f32 -1.442695, %v373_v5 }
 0x14e   :  { %v297_v56 = vpop.f32.mrf.mxu1 }
 0x14f   :  { %v298_v58 = vadd.f32 %v297_v56, %v197_v8  ;;  %v351_v0 = vadd.f32 %v350_v55, %v349_v52  ;;  %v361_v8 = vadd.f32 %v336_v6, %v333_v10  ;;  %497 = vpow2.f32 %v477_v61 }
 0x150   :  { %v442_v55 = vlaneseq }
 0x151   :  { %v311_v4 = vmax.f32 %v298_v58, 0.0  ;;  %v372_v7 = vadd.f32 %v371_v60, %v351_v0 }
 0x152   :  { %vm444_vm0 = vcmp.lt.s32.totalorder %v442_v55, 384 }
 0x153   :  { %v339_v63 = vmul.f32 %v325_v18, %v311_v4  ;;  %v476_v14 = vmul.f32 -1.442695, %v372_v7 }
 0x155   :  { %v362_v15 = vadd.f32 %v361_v8, %v339_v63  ;;  %499 = vpow2.f32 %v476_v14  ;;  %v498_v21 = vpop.eup %497 }
 0x156   :  { %v300_v9 = vpop.f32.mrf.mxu1  ;;  %v385_v23 = vadd.f32 1.0, %v498_v21 }
 0x157   :  { %v301_v12 = vadd.f32 %v300_v9, %v670_v1 }
 0x158   :  { %501 = vrcp.f32 %v385_v23  ;;  %vm407_vm3 = vweird.f32 %v385_v23  ;;  %v413_v39 = vand.u32 2147483648, %v385_v23  ;;  %v411_v41 = vand.u32 2147483647, %v385_v23 }
 0x159   :  { %v314_v13 = vmax.f32 %v301_v12, 0.0 }
 0x15a   :  { %v414_v48 = vor.u32 1.1754944e-38, %v413_v39  ;;  %vm412_vm9 = vcmp.eq.f32.partialorder %v411_v41, 8.507059e+37 }
 0x15b   :  { %v342_v16 = vmul.f32 %v329_v30, %v314_v13  ;;  %v500_v22 = vpop.eup %499 }
 0x15c   :  { %v384_v3 = vadd.f32 1.0, %v500_v22 }
 0x15d   :  { %v363_v17 = vadd.f32 %v362_v15, %v342_v16 }
 0x15e   :  { %503 = vrcp.f32 %v384_v3  ;;  %v502_v27 = vpop.eup %501  ;;  %v398_v43 = vand.u32 2147483648, %v384_v3  ;;  %vm392_vm6 = vweird.f32 %v384_v3  ;;  %v396_v46 = vand.u32 2147483647, %v384_v3 }
 0x15f   :  { %v364_v19 = vrot.slane %v363_v17, 4  ;;  %v403_v29 = vmul.f32 %v502_v27, %v385_v23  ;;  %vm408_vm2 = vweird.f32 %v502_v27 }
 0x160   :  { %vm409_vm5 = vmor %vm407_vm3, %vm408_vm2  ;;  %v399_v52 = vor.u32 1.1754944e-38, %v398_v43  ;;  %vm397_vm11 = vcmp.eq.f32.partialorder %v396_v46, 8.507059e+37 }
 0x161   :  { %v365_v20 = vadd.f32 %v364_v19, %v363_v17  ;;  %v404_v32 = vsub.f32 1.0, %v403_v29 }
 0x163   :  { %v366_v11 = vrot.slane %v365_v20, 2  ;;  %v405_v35 = vmul.f32 %v502_v27, %v404_v32 }
 0x164   :  { %v504_v28 = vpop.eup %503 }
 0x165   :  { %v367_v24 = vadd.f32 %v366_v11, %v365_v20  ;;  %v388_v30 = vmul.f32 %v504_v28, %v384_v3  ;;  %v406_v38 = vadd.f32 %v502_v27, %v405_v35  ;;  %vm393_vm4 = vweird.f32 %v504_v28 }
 0x166   :  { %vm394_vm7 = vmor %vm392_vm6, %vm393_vm4 }
 0x167   :  { %v368_v18 = vrot.slane %v367_v24, 1  ;;  %v389_v34 = vsub.f32 1.0, %v388_v30  ;;  %v410_v45 = vsel %vm409_vm5, %v502_v27, %v406_v38 }
 0x168   :  { %v415_v53 = vsel %vm412_vm9, %v414_v48, %v410_v45 }
 0x169   :  { %v369_v1 = vadd.f32 %v368_v18, %v367_v24  ;;  %v390_v36 = vmul.f32 %v504_v28, %v389_v34  ;;  %v435_v59 = vrot.slane %v415_v53, 7 }
 0x16b   :  { %v374_v25 = vadd.f32 %v371_v60, %v369_v1  ;;  %v391_v42 = vadd.f32 %v504_v28, %v390_v36 }
 0x16d   :  { %v478_v26 = vmul.f32 -1.442695, %v374_v25  ;;  %v395_v51 = vsel %vm394_vm7, %v504_v28, %v391_v42 }
 0x16e   :  { %v400_v57 = vsel %vm397_vm11, %v399_v52, %v395_v51 }
 0x16f   :  { %505 = vpow2.f32 %v478_v26  ;;  %v438_v0 = vsel %vm437_vm13, %v400_v57, %v435_v59 }
 0x175   :  { %v506_v31 = vpop.eup %505 }
 0x176   :  { %v386_v33 = vadd.f32 1.0, %v506_v31 }
 0x178   :  { %507 = vrcp.f32 %v386_v33  ;;  %v428_v47 = vand.u32 2147483648, %v386_v33  ;;  %v426_v50 = vand.u32 2147483647, %v386_v33  ;;  %vm422_vm10 = vweird.f32 %v386_v33 }
 0x17a   :  { %v429_v56 = vor.u32 1.1754944e-38, %v428_v47  ;;  %vm427_vm14 = vcmp.eq.f32.partialorder %v426_v50, 8.507059e+37 }
 0x17e   :  { %v508_v37 = vpop.eup %507 }
 0x17f   :  { %v418_v40 = vmul.f32 %v508_v37, %v386_v33  ;;  %vm423_vm8 = vweird.f32 %v508_v37 }
 0x180   :  { %vm424_vm12 = vmor %vm422_vm10, %vm423_vm8 }
 0x181   :  { %v419_v44 = vsub.f32 1.0, %v418_v40 }
 0x183   :  { %v420_v49 = vmul.f32 %v508_v37, %v419_v44 }
 0x185   :  { %v421_v54 = vadd.f32 %v508_v37, %v420_v49 }
 0x187   :  { %v425_v58 = vsel %vm424_vm12, %v508_v37, %v421_v54 }
 0x188   :  { %v430_v60 = vsel %vm427_vm14, %v429_v56, %v425_v58 }
 0x189   :  { %v436_v62 = vrot.slane %v430_v60, 6 }
 0x18b   :  { %v440_v2 = vsel %vm439_vm15, %v438_v0, %v436_v62 }
 0x18c   :  { %446 = vst.msk [vmem:[%s691_s5] sm:$0x7] %vm444_vm0, %v440_v2 }
 0x18d   :  { %451 = vsyncpa [#allocation4], 1 }

</bundles_post_ra>
